<compile_context>
chip_gen: v7x
topology: tpu7x:2x2x1
jax: 0.10.0
libtpu: 0.0.40
codegen_flags: <defaults>
</compile_context>

<pallas_src>
import jax
import jax.numpy as jnp
from jax.experimental import pallas as pl
from jax.experimental.pallas import tpu as pltpu

IN_FEATURES = 3
OUT_FEATURES = 1
LANE = 128          # lane width
R_MAX = 2048        # max sublane-rows per grid step (3 MiB input block)


def _round_up(n, m):
    return ((n + m - 1) // m) * m


def _linear_kernel(wb_ref, x_ref, o_ref):
    # wb_ref: (4,)          f32 in SMEM -> [w0, w1, w2, b]
    # x_ref : (3, R, 128)   f32 in VMEM, batch folded onto (sublanes, lanes)
    # o_ref : (R, 128)      f32 in VMEM, dense output tile
    w0 = wb_ref[0]
    w1 = wb_ref[1]
    w2 = wb_ref[2]
    b = wb_ref[3]
    o_ref[...] = w0 * x_ref[0] + w1 * x_ref[1] + w2 * x_ref[2] + b


def linear_pallas(x, weight, bias):
    """y = x @ weight.T + bias, matching torch.nn.Linear(3, 1).

    x: (..., 3) float32
    weight: (1, 3) float32
    bias: (1,) float32
    """
    orig_shape = x.shape
    x2d = x.reshape(-1, IN_FEATURES).astype(jnp.float32)
    B = x2d.shape[0]

    # Pad the batch only up to the next multiple of 128 (lane width), then fold
    # it onto (rows, 128) so both sublanes and lanes are dense.
    b_pad = _round_up(B, LANE)
    rows = b_pad // LANE

    xt = x2d.T  # (3, B) — batch onto the fast axis
    if b_pad != B:
        xt = jnp.pad(xt, ((0, 0), (0, b_pad - B)))
    xt = xt.reshape(IN_FEATURES, rows, LANE)

    # Block rows: full extent if it fits, else R_MAX (multiple of 8); the tail
    # block is handled by Pallas partial-block clipping.
    r_block = rows if rows <= R_MAX else R_MAX
    grid = (pl.cdiv(rows, r_block),)

    # 4 scalars (w0, w1, w2, b) for SMEM.
    wb = jnp.concatenate(
        [weight.astype(jnp.float32).reshape(-1), bias.astype(jnp.float32).reshape(-1)]
    )  # (4,)

    out = pl.pallas_call(
        _linear_kernel,
        out_shape=jax.ShapeDtypeStruct((rows, LANE), jnp.float32),
        grid_spec=pltpu.PrefetchScalarGridSpec(
            num_scalar_prefetch=0,
            grid=grid,
            in_specs=[
                pl.BlockSpec(memory_space=pltpu.MemorySpace.SMEM),          # wb (4,)
                pl.BlockSpec((IN_FEATURES, r_block, LANE), lambda i: (0, i, 0)),
            ],
            out_specs=pl.BlockSpec((r_block, LANE), lambda i: (i, 0)),
        ),
        compiler_params=pltpu.CompilerParams(
            dimension_semantics=("parallel",),
            vmem_limit_bytes=32 * 1024 * 1024,
        ),
    )(wb, xt)

    y = out.reshape(-1)          # (b_pad,) — free reshape of a contiguous slab
    if b_pad != B:
        y = y[:B]                # only pay the slice when padding was applied
    return y.reshape(orig_shape[:-1] + (OUT_FEATURES,))


def init_params():
    # Deterministic init mimicking torch.nn.Linear defaults (uniform(-1/sqrt(3), 1/sqrt(3))).
    key = jax.random.PRNGKey(42)
    kw, kb = jax.random.split(key)
    bound = 1.0 / jnp.sqrt(jnp.float32(IN_FEATURES))
    weight = jax.random.uniform(
        kw, (OUT_FEATURES, IN_FEATURES), jnp.float32, -bound, bound
    )
    bias = jax.random.uniform(kb, (OUT_FEATURES,), jnp.float32, -bound, bound)
    return weight, bias


if __name__ == "__main__":
    weight, bias = init_params()

    key = jax.random.PRNGKey(0)
    k1, k2, k3 = jax.random.split(key, 3)
    x_batched = jax.random.uniform(k1, (8, IN_FEATURES), jnp.float32)   # small batch
    x_vec = jax.random.uniform(k2, (IN_FEATURES,), jnp.float32)         # dummy_input()
    x_tail = jax.random.uniform(k3, (300, IN_FEATURES), jnp.float32)    # non-128 batch

    y_batched = jax.block_until_ready(linear_pallas(x_batched, weight, bias))
    y_vec = jax.block_until_ready(linear_pallas(x_vec, weight, bias))
    y_tail = jax.block_until_ready(linear_pallas(x_tail, weight, bias))

    # Reference check in plain JAX.
    ref_batched = x_batched @ weight.T + bias
    ref_vec = x_vec @ weight.T + bias
    ref_tail = x_tail @ weight.T + bias
    assert y_batched.shape == (8, OUT_FEATURES)
    assert y_vec.shape == (OUT_FEATURES,)
    assert y_tail.shape == (300, OUT_FEATURES)
    assert jnp.allclose(y_batched, ref_batched, atol=1e-5, rtol=1e-5)
    assert jnp.allclose(y_vec, ref_vec, atol=1e-5, rtol=1e-5)
    assert jnp.allclose(y_tail, ref_tail, atol=1e-5, rtol=1e-5)

    print("KERNEL_OK")
</pallas_src>

<mosaic_0001>
module attributes {stable_mosaic.version = 11 : i64} {
  func.func @_linear_kernel(%arg0: i32, %arg1: memref<4xf32, #tpu.memory_space<smem>>, %arg2: memref<3x1x128xf32, #tpu.memory_space<vmem>>, %arg3: memref<1x128xf32, #tpu.memory_space<vmem>>) attributes {dimension_semantics = [#tpu.dimension_semantics<parallel>], iteration_bounds = array<i64: 1>, scalar_prefetch = 0 : i64, scratch_operands = 0 : i64, tpu.core_type = #tpu.core_type<tc>, window_params = [{transform_indices = @transform_0, window_bounds = array<i64: 4>}, {transform_indices = @transform_1, window_bounds = array<i64: 3, 1, 128>}, {transform_indices = @transform_2, window_bounds = array<i64: 1, 128>}]} {
    %c0 = arith.constant 0 : index
    %0 = memref.load %arg1[%c0] : memref<4xf32, #tpu.memory_space<smem>>
    %c1 = arith.constant 1 : index
    %1 = memref.load %arg1[%c1] : memref<4xf32, #tpu.memory_space<smem>>
    %c2 = arith.constant 2 : index
    %2 = memref.load %arg1[%c2] : memref<4xf32, #tpu.memory_space<smem>>
    %c3 = arith.constant 3 : index
    %3 = memref.load %arg1[%c3] : memref<4xf32, #tpu.memory_space<smem>>
    %c0_0 = arith.constant 0 : index
    %c0_1 = arith.constant 0 : index
    %c0_2 = arith.constant 0 : index
    %4 = vector.load %arg2[%c0_0, %c0_1, %c0_2] : memref<3x1x128xf32, #tpu.memory_space<vmem>>, vector<1x1x128xf32>
    %5 = vector.shape_cast %4 : vector<1x1x128xf32> to vector<1x128xf32>
    %6 = vector.broadcast %0 : f32 to vector<1x128xf32>
    %7 = arith.mulf %6, %5 : vector<1x128xf32>
    %c1_3 = arith.constant 1 : index
    %c0_4 = arith.constant 0 : index
    %c0_5 = arith.constant 0 : index
    %8 = vector.load %arg2[%c1_3, %c0_4, %c0_5] : memref<3x1x128xf32, #tpu.memory_space<vmem>>, vector<1x1x128xf32>
    %9 = vector.shape_cast %8 : vector<1x1x128xf32> to vector<1x128xf32>
    %10 = vector.broadcast %1 : f32 to vector<1x128xf32>
    %11 = arith.mulf %10, %9 : vector<1x128xf32>
    %12 = arith.addf %7, %11 : vector<1x128xf32>
    %c2_6 = arith.constant 2 : index
    %c0_7 = arith.constant 0 : index
    %c0_8 = arith.constant 0 : index
    %13 = vector.load %arg2[%c2_6, %c0_7, %c0_8] : memref<3x1x128xf32, #tpu.memory_space<vmem>>, vector<1x1x128xf32>
    %14 = vector.shape_cast %13 : vector<1x1x128xf32> to vector<1x128xf32>
    %15 = vector.broadcast %2 : f32 to vector<1x128xf32>
    %16 = arith.mulf %15, %14 : vector<1x128xf32>
    %17 = arith.addf %12, %16 : vector<1x128xf32>
    %18 = vector.broadcast %3 : f32 to vector<1x128xf32>
    %19 = arith.addf %17, %18 : vector<1x128xf32>
    %c0_9 = arith.constant 0 : index
    %c0_10 = arith.constant 0 : index
    %20 = vector.load %arg3[%c0_9, %c0_10] : memref<1x128xf32, #tpu.memory_space<vmem>>, vector<1x128xf32>
    tpu.vector_store %arg3[%c0_9, %c0_10], %19 {strides = array<i32>} : memref<1x128xf32, #tpu.memory_space<vmem>>, vector<1x128xf32>,
    return
  }
  func.func @transform_0(%arg0: i32) -> i32 {
    %c0_i32 = arith.constant 0 : i32
    %c0_i32_0 = arith.constant 0 : i32
    return %c0_i32 : i32
  }
  func.func @transform_1(%arg0: i32) -> (i32, i32, i32) {
    %c0_i32 = arith.constant 0 : i32
    %c0_i32_0 = arith.constant 0 : i32
    %c0_i32_1 = arith.constant 0 : i32
    return %c0_i32, %arg0, %c0_i32_0 : i32, i32, i32
  }
  func.func @transform_2(%arg0: i32) -> (i32, i32) {
    %c0_i32 = arith.constant 0 : i32
    %c0_i32_0 = arith.constant 0 : i32
    return %arg0, %c0_i32 : i32, i32
  }
}

</mosaic_0001>

<bundles_post_ra>
// kernel: tpu_custom_call.1
= control target key start
LH: loop header
LB: loop body
LE: loop exit
PB: predicated region body
PF: predicated region fallthrough
CT: control target
= control target key end

     0   :  { %7 = vsyncpa [#allocation4], 0  ;;  %s151_s0 = inlined_call_operand.hbm [shape: f32[4], index: 0, kind: input, shape index: {}]   ;;  %s152_s1 = inlined_call_operand.vmem [shape: f32[3,1,128], index: 1, kind: input, shape index: {}]   ;;  %s153_s2 = inlined_call_operand.hbm [shape: f32[1,128], index: 2, kind: output, shape index: {}]  }
   0x1   :  { %8 = vsyncpa [#allocation3], 0  ;;  %s65_s11 = scalar_lea.hbm %s151_s0, 16 }
   0x2   :  { %p66_p0 = scmp.ne.s32.totalorder %s151_s0, %s65_s11  ;;  %p69_p1 = scmp.lt.u32.totalorder %s65_s11, %s151_s0 }
   0x4   :  { %p71_p2 = pnand %p69_p1, %p66_p0 }
   0x6   :  { %74 = shalt.err (!%p71_p2)
}
   0x7   :  { %s101_s16 = smov [#allocation2]  }
   0x8   :  { %16 = dma.hbm_to_smem %s151_s0, 16, %s101_s16, [#allocation4]  }
   0x9   :  { %97 = dma.done.wait [#allocation4], 16  }
   0xa   :  { %98 = vsyncadd [#allocation4], 4294967280 }
   0xb   :  { %22 = sfence }
   0xc   :  { %s23_s19 = sld [smem:[#allocation2]]  ;;  %s58_s20 = sld [smem:[#allocation2 + $0x1]]  ;;  %v27_v0 = vld [vmem:[%s152_s1] sm:$0x1]  ;;  %v61_v1 = vld [vmem:[%s152_s1 + $0x1] sm:$0x1] }
   0xd   :  { %s59_s21 = sld [smem:[#allocation2 + $0x2]]  ;;  %s60_s22 = sld [smem:[#allocation2 + $0x3]]  ;;  %v62_v2 = vld [vmem:[%s152_s1 + $0x2] sm:$0x1] }
   0xe   :  { %s102_s0 = smov [#allocation5]  }
   0xf   :  { %s49_s29 = sshll.u32 %s102_s0, 4  ;;  %s50_s29 = int_to_ptr.vmem [resolvable:$true] %s49_s29 }
  0x10   :  { %s75_s30 = scalar_lea.vmem %s50_s29, 16  ;;  %s79_s3 = scalar_lea.vmem %s50_s29, 32 }
  0x11   :  { %p76_p3 = scmp.ne.s32.totalorder %s50_s29, %s75_s30  ;;  %p80_p4 = scmp.lt.s32.totalorder %s50_s29, %s50_s29 }
  0x12   :  { %v28_v3 = vstv %s23_s19  ;;  %v32_v4 = vstv %s58_s20  ;;  %p81_p5 = scmp.lt.s32.totalorder %s79_s3, %s75_s30 }
  0x13   :  { %v29_v5 = vmul.f32 %v28_v3, %v27_v0  ;;  %v33_v6 = vmul.f32 %v61_v1, %v32_v4  ;;  %v37_v7 = vstv %s59_s21  ;;  %v40_v10 = vstv %s60_s22 }
  0x14   :  { %v38_v8 = vmul.f32 %v62_v2, %v37_v7  ;;  %p82_p6 = por %p81_p5, %p80_p4 }
  0x15   :  { %v34_v9 = vadd.f32 %v33_v6, %v29_v5 }
  0x16   :  { %p83_p7 = pnand %p82_p6, %p76_p3 }
  0x17   :  { %v39_v11 = vadd.f32 %v38_v8, %v34_v9 }
  0x19   :  { %v41_v12 = vadd.f32 %v40_v10, %v39_v11 }
  0x1b   :  { %42 = vst [vmem:[#allocation5] sm:$0x1] %v41_v12 }
  0x1c   :  { %86 = shalt.err (!%p83_p7)
}
  0x1d   :  { %s87_s5 = scalar_lea.hbm %s153_s2, 16 }
  0x1e   :  { %p88_p8 = scmp.ne.s32.totalorder %s153_s2, %s87_s5  ;;  %p91_p9 = scmp.lt.u32.totalorder %s87_s5, %s153_s2 }
  0x20   :  { %p93_p10 = pnand %p91_p9, %p88_p8 }
  0x22   :  { %96 = shalt.err (!%p93_p10)
}
  0x23   :  { %52 = dma.vmem_to_hbm [thread:$0]  %s50_s29, 16, %s153_s2, [#allocation3]  }
  0x24   :  { %99 = dma.done.wait [#allocation3], 16  }
  0x25   :  { %100 = vsyncadd [#allocation3], 4294967280 }
  0x26   :  { %56 = vsyncpa [#allocation3], 1 }
  0x27   :  { %57 = vsyncpa [#allocation4], 1 }

</bundles_post_ra>
